<compile_context>
chip_gen: v5e
topology: v5e:2x2
jax: 0.10.0
libtpu: 0.0.40
codegen_flags: <defaults>
</compile_context>

<pallas_src>
import functools

import jax
import jax.numpy as jnp
from jax.experimental import pallas as pl
from jax.experimental.pallas import tpu as pltpu

_LANE = 128      # lane width: last-dim tile quantum
_SUBLANE = 8     # f32 sublane height: second-to-last-dim tile quantum

# Working sets below this stay in the single fused kernel; chosen with plenty
# of headroom under v7x's 64 MiB physical / 32 MiB default-scoped VMEM.
_FUSED_VMEM_BUDGET_BYTES = 8 * 1024 * 1024


def _round_up(x: int, m: int) -> int:
    return (x + m - 1) // m * m


# ---------------------------------------------------------------------------
# Path 1: whole MLP fused in one kernel (small networks, everything in VMEM).
# ---------------------------------------------------------------------------
def _fused_mlp_kernel(*refs, num_layers: int):
    """refs = (x, w0, b0, ..., w_{L-1}, b_{L-1}, out); all blocks VMEM-resident.

    Intermediate activations stay as in-kernel values (vregs); no HBM traffic.
    """
    x_ref, o_ref = refs[0], refs[-1]
    wb = refs[1:-1]
    act = x_ref[...].astype(jnp.float32)
    for i in range(num_layers):
        w = wb[2 * i][...]
        b = wb[2 * i + 1][...]              # (1, out) broadcasts over batch
        act = jnp.dot(act, w, preferred_element_type=jnp.float32) + b
        if i < num_layers - 1:              # hidden layers only
            act = jnp.maximum(act, 0.0)
    o_ref[...] = act.astype(o_ref.dtype)


def _fused_mlp_call(x_pad, padded_params):
    num_layers = len(padded_params)
    flat = [a for wb in padded_params for a in wb]
    bp = x_pad.shape[0]
    out_pad = padded_params[-1][0].shape[1]
    vmem = pl.BlockSpec(memory_space=pltpu.MemorySpace.VMEM)
    return pl.pallas_call(
        functools.partial(_fused_mlp_kernel, num_layers=num_layers),
        out_shape=jax.ShapeDtypeStruct((bp, out_pad), jnp.float32),
        in_specs=[vmem] * (1 + len(flat)),
        out_specs=vmem,
    )(x_pad, *flat)


# ---------------------------------------------------------------------------
# Path 2: tiled per-layer linear with a K-reduction pipeline (large shapes).
# ---------------------------------------------------------------------------
def _tiled_linear_kernel(x_ref, w_ref, b_ref, o_ref, acc_ref, *, apply_relu: bool):
    k = pl.program_id(2)

    @pl.when(k == 0)
    def _():
        # Fold the bias into the accumulator init: one broadcast per output
        # tile instead of a re-broadcast + add on every K step.
        acc_ref[...] = jnp.broadcast_to(b_ref[...].astype(jnp.float32),
                                        acc_ref.shape)

    acc_ref[...] += jnp.dot(x_ref[...], w_ref[...],
                            preferred_element_type=jnp.float32)

    @pl.when(k == pl.num_programs(2) - 1)
    def _():
        r = acc_ref[...]
        if apply_relu:
            r = jnp.maximum(r, 0.0)
        o_ref[...] = r.astype(o_ref.dtype)


def _pick_tile(dim: int, preferred: int, quantum: int) -> int:
    """Largest tile <= preferred that divides dim (dim is a quantum multiple)."""
    if dim <= preferred:
        return dim
    t = preferred
    while dim % t:
        t -= quantum
    return t


def _tiled_linear(x, w, b, *, apply_relu: bool,
                  tm_pref: int = 256, tn_pref: int = 256, tk_pref: int = 256):
    m, kdim = x.shape
    _, n = w.shape
    tm = _pick_tile(m, tm_pref, _SUBLANE)
    tn = _pick_tile(n, tn_pref, _LANE)
    tk = _pick_tile(kdim, tk_pref, _LANE)
    grid = (m // tm, n // tn, kdim // tk)
    return pl.pallas_call(
        functools.partial(_tiled_linear_kernel, apply_relu=apply_relu),
        out_shape=jax.ShapeDtypeStruct((m, n), x.dtype),
        grid=grid,
        in_specs=[
            pl.BlockSpec((tm, tk), lambda i, j, k: (i, k)),
            pl.BlockSpec((tk, tn), lambda i, j, k: (k, j)),
            pl.BlockSpec((1, tn), lambda i, j, k: (0, j)),
        ],
        out_specs=pl.BlockSpec((tm, tn), lambda i, j, k: (i, j)),
        scratch_shapes=[pltpu.VMEM((tm, tn), jnp.float32)],
        compiler_params=pltpu.CompilerParams(
            dimension_semantics=("parallel", "parallel", "arbitrary")),
    )(x, w, b)


# ---------------------------------------------------------------------------
# Wrapper: padding (layout plumbing) + path dispatch.
# ---------------------------------------------------------------------------
def _pad_params(params):
    padded = []
    for w, b in params:
        in_f, out_f = w.shape
        ip, op = _round_up(in_f, _LANE), _round_up(out_f, _LANE)
        wp = jnp.zeros((ip, op), jnp.float32).at[:in_f, :out_f].set(w)
        bp = jnp.zeros((1, op), jnp.float32).at[:, :out_f].set(
            b.reshape(1, out_f))
        padded.append((wp, bp))
    return padded


def _fused_working_set_bytes(bp, padded):
    dims = [padded[0][0].shape[0]] + [w.shape[1] for w, _ in padded]
    total = sum(w.size + b.size for w, b in padded)   # all weights/biases
    total += bp * dims[0] + bp * dims[-1]             # input + output blocks
    total += 2 * bp * max(dims)                       # live-activation headroom
    return total * 4                                  # f32 bytes


def mlp_forward(params, state):
    """state: [batch, input_size] -> [batch, output_size] (matches MLP.forward)."""
    batch, in_f = state.shape
    out_f = params[-1][0].shape[1]

    padded = _pad_params(params)
    bp = _round_up(max(batch, _SUBLANE), _SUBLANE)
    in_pad = padded[0][0].shape[0]
    x = jnp.zeros((bp, in_pad), jnp.float32).at[:batch, :in_f].set(
        state.astype(jnp.float32))

    if _fused_working_set_bytes(bp, padded) <= _FUSED_VMEM_BUDGET_BYTES:
        y = _fused_mlp_call(x, padded)
    else:
        # TODO(synk): at very large sizes, additionally cast inputs to bf16
        # (f32 accumulate) on v6e/v7x and fuse each layer's ReLU into the next
        # layer's first K step for another ~2x on the matmul-bound regime.
        num_layers = len(padded)
        for i, (w, b) in enumerate(padded):
            x = _tiled_linear(x, w, b, apply_relu=(i < num_layers - 1))
        y = x
    return y[:batch, :out_f]


# ---------------------------------------------------------------------------
# Init (torch.nn.Linear-style) and pure-JAX reference.
# ---------------------------------------------------------------------------
def init_mlp_params(key, input_size: int, hidden_sizes: list[int], output_size: int):
    """W, b ~ U(-1/sqrt(fan_in), 1/sqrt(fan_in)); weights stored as [in, out]."""
    params = []
    sizes = [input_size] + list(hidden_sizes) + [output_size]
    for i in range(len(sizes) - 1):
        fan_in, fan_out = sizes[i], sizes[i + 1]
        key, kw, kb = jax.random.split(key, 3)
        bound = 1.0 / (fan_in ** 0.5)
        w = jax.random.uniform(kw, (fan_in, fan_out), jnp.float32, -bound, bound)
        b = jax.random.uniform(kb, (1, fan_out), jnp.float32, -bound, bound)
        params.append((w, b))
    return params


def mlp_reference(params, state):
    x = state
    for w, b in params[:-1]:
        x = jnp.maximum(x @ w + b, 0.0)
    w_out, b_out = params[-1]
    return x @ w_out + b_out


if __name__ == "__main__":
    key = jax.random.PRNGKey(0)

    # --- Small case (module-consistent shapes): fused single-kernel path. ---
    batch, input_size, hidden_sizes, output_size = 2, 16, [32, 32], 8
    key, kx = jax.random.split(key)
    state = jax.random.normal(kx, (batch, input_size), jnp.float32)
    params = init_mlp_params(key, input_size, hidden_sizes, output_size)

    fwd = jax.jit(mlp_forward)
    out = jax.block_until_ready(fwd(params, state))
    ref = mlp_reference(params, state)
    assert out.shape == (batch, output_size)
    assert jnp.allclose(out, ref, atol=1e-5, rtol=1e-5), "fused path mismatch"

    # --- Larger case: exercises the tiled K-reduction path. ---
    batch2, in2, hid2, out2 = 256, 1024, [1536], 1024
    key, kx2 = jax.random.split(key)
    state2 = jax.random.normal(kx2, (batch2, in2), jnp.float32)
    params2 = init_mlp_params(key, in2, hid2, out2)

    out_big = jax.block_until_ready(fwd(params2, state2))
    ref_big = mlp_reference(params2, state2)
    assert out_big.shape == (batch2, out2)
    assert jnp.allclose(out_big, ref_big, atol=2e-3, rtol=2e-3), "tiled path mismatch"

    print("KERNEL_OK")
</pallas_src>

<mosaic_0001>
module attributes {stable_mosaic.version = 11 : i64} {
  func.func @_fused_mlp_kernel(%arg0: memref<8x128xf32, #tpu.memory_space<vmem>>, %arg1: memref<128x128xf32, #tpu.memory_space<vmem>>, %arg2: memref<1x128xf32, #tpu.memory_space<vmem>>, %arg3: memref<128x128xf32, #tpu.memory_space<vmem>>, %arg4: memref<1x128xf32, #tpu.memory_space<vmem>>, %arg5: memref<128x128xf32, #tpu.memory_space<vmem>>, %arg6: memref<1x128xf32, #tpu.memory_space<vmem>>, %arg7: memref<8x128xf32, #tpu.memory_space<vmem>>) attributes {dimension_semantics = [], scalar_prefetch = 0 : i64, scratch_operands = 0 : i64, tpu.core_type = #tpu.core_type<tc>} {
    %c0 = arith.constant 0 : index
    %c0_0 = arith.constant 0 : index
    %0 = vector.load %arg0[%c0, %c0_0] : memref<8x128xf32, #tpu.memory_space<vmem>>, vector<8x128xf32>
    %c0_1 = arith.constant 0 : index
    %c0_2 = arith.constant 0 : index
    %1 = vector.load %arg1[%c0_1, %c0_2] : memref<128x128xf32, #tpu.memory_space<vmem>>, vector<128x128xf32>
    %c0_3 = arith.constant 0 : index
    %c0_4 = arith.constant 0 : index
    %2 = vector.load %arg2[%c0_3, %c0_4] : memref<1x128xf32, #tpu.memory_space<vmem>>, vector<1x128xf32>
    %cst = arith.constant dense<0.000000e+00> : vector<8x128xf32>
    %3 = tpu.matmul %0, %1, %cst {dimension_numbers = #tpu.dot_dimension_numbers<[1], [0], [0], [1], [0, 0, 1, 1], [], []>} : vector<8x128xf32>, vector<128x128xf32>, vector<8x128xf32> -> vector<8x128xf32>
    %4 = vector.broadcast %2 : vector<1x128xf32> to vector<8x128xf32>
    %5 = arith.addf %3, %4 : vector<8x128xf32>
    %cst_5 = arith.constant 0.000000e+00 : f32
    %6 = vector.broadcast %cst_5 : f32 to vector<8x128xf32>
    %7 = arith.maximumf %5, %6 : vector<8x128xf32>
    %c0_6 = arith.constant 0 : index
    %c0_7 = arith.constant 0 : index
    %8 = vector.load %arg3[%c0_6, %c0_7] : memref<128x128xf32, #tpu.memory_space<vmem>>, vector<128x128xf32>
    %c0_8 = arith.constant 0 : index
    %c0_9 = arith.constant 0 : index
    %9 = vector.load %arg4[%c0_8, %c0_9] : memref<1x128xf32, #tpu.memory_space<vmem>>, vector<1x128xf32>
    %cst_10 = arith.constant dense<0.000000e+00> : vector<8x128xf32>
    %10 = tpu.matmul %7, %8, %cst_10 {dimension_numbers = #tpu.dot_dimension_numbers<[1], [0], [0], [1], [0, 0, 1, 1], [], []>} : vector<8x128xf32>, vector<128x128xf32>, vector<8x128xf32> -> vector<8x128xf32>
    %11 = vector.broadcast %9 : vector<1x128xf32> to vector<8x128xf32>
    %12 = arith.addf %10, %11 : vector<8x128xf32>
    %cst_11 = arith.constant 0.000000e+00 : f32
    %13 = vector.broadcast %cst_11 : f32 to vector<8x128xf32>
    %14 = arith.maximumf %12, %13 : vector<8x128xf32>
    %c0_12 = arith.constant 0 : index
    %c0_13 = arith.constant 0 : index
    %15 = vector.load %arg5[%c0_12, %c0_13] : memref<128x128xf32, #tpu.memory_space<vmem>>, vector<128x128xf32>
    %c0_14 = arith.constant 0 : index
    %c0_15 = arith.constant 0 : index
    %16 = vector.load %arg6[%c0_14, %c0_15] : memref<1x128xf32, #tpu.memory_space<vmem>>, vector<1x128xf32>
    %cst_16 = arith.constant dense<0.000000e+00> : vector<8x128xf32>
    %17 = tpu.matmul %14, %15, %cst_16 {dimension_numbers = #tpu.dot_dimension_numbers<[1], [0], [0], [1], [0, 0, 1, 1], [], []>} : vector<8x128xf32>, vector<128x128xf32>, vector<8x128xf32> -> vector<8x128xf32>
    %18 = vector.broadcast %16 : vector<1x128xf32> to vector<8x128xf32>
    %19 = arith.addf %17, %18 : vector<8x128xf32>
    %c0_17 = arith.constant 0 : index
    %c0_18 = arith.constant 0 : index
    %20 = vector.load %arg7[%c0_17, %c0_18] : memref<8x128xf32, #tpu.memory_space<vmem>>, vector<8x128xf32>
    tpu.vector_store %arg7[%c0_17, %c0_18], %19 {strides = array<i32>} : memref<8x128xf32, #tpu.memory_space<vmem>>, vector<8x128xf32>,
    return
  }
}

</mosaic_0001>

<bundles_post_ra>
// kernel: mlp_forward.1
= control target key start
LH: loop header
LB: loop body
LE: loop exit
PB: predicated region body
PF: predicated region fallthrough
CT: control target
= control target key end

     0   :  { %s356_s1 = inlined_call_operand.vmem [shape: f32[128,128], index: 1, kind: input, shape index: {}]   ;;  %s357_s3 = inlined_call_operand.vmem [shape: f32[128,128], index: 3, kind: input, shape index: {}]   ;;  %s358_s2 = inlined_call_operand.vmem [shape: f32[1,128], index: 2, kind: input, shape index: {}]   ;;  %s359_s0 = inlined_call_operand.vmem [shape: f32[8,128], index: 0, kind: input, shape index: {}]   ;;  %s360_s4 = inlined_call_operand.vmem [shape: f32[1,128], index: 4, kind: input, shape index: {}]   ;;  %s361_s5 = inlined_call_operand.vmem [shape: f32[128,128], index: 5, kind: input, shape index: {}]   ;;  %s362_s6 = inlined_call_operand.vmem [shape: f32[1,128], index: 6, kind: input, shape index: {}]   ;;  %s363_s7 = inlined_call_operand.vmem [shape: f32[8,128], index: 7, kind: output, shape index: {}]  }
   0x1   :  { %v42_v0 = vld [vmem:[%s356_s1 + $0x78] sm:$0xff]  ;;  %v41_v1 = vld [vmem:[%s356_s1 + $0x70] sm:$0xff]  ;;  %v40_v2 = vld [vmem:[%s356_s1 + $0x68] sm:$0xff] }
   0x2   :  { %47 = vmatpush.msra.mxu0 %v42_v0  ;;  %v39_v3 = vld [vmem:[%s356_s1 + $0x60] sm:$0xff]  ;;  %v83_v4 = vld [vmem:[%s357_s3 + $0x78] sm:$0xff]  ;;  %v82_v6 = vld [vmem:[%s357_s3 + $0x70] sm:$0xff] }
   0x3   :  { %v38_v5 = vld [vmem:[%s356_s1 + $0x58] sm:$0xff]  ;;  %88 = vmatpush.msra.mxu1 %v83_v4  ;;  %v81_v7 = vld [vmem:[%s357_s3 + $0x68] sm:$0xff]  ;;  %v37_v8 = vld [vmem:[%s356_s1 + $0x50] sm:$0xff] }
   0x4   :  { %48 = vmatpush.msra.mxu0 %v41_v1  ;;  %v80_v9 = vld [vmem:[%s357_s3 + $0x60] sm:$0xff]  ;;  %v36_v10 = vld [vmem:[%s356_s1 + $0x48] sm:$0xff]  ;;  %v79_v11 = vld [vmem:[%s357_s3 + $0x58] sm:$0xff] }
   0x5   :  { %89 = vmatpush.msra.mxu1 %v82_v6  ;;  %v35_v12 = vld [vmem:[%s356_s1 + $0x40] sm:$0xff]  ;;  %v78_v13 = vld [vmem:[%s357_s3 + $0x50] sm:$0xff]  ;;  %v34_v14 = vld [vmem:[%s356_s1 + $0x38] sm:$0xff] }
   0x6   :  { %49 = vmatpush.msra.mxu0 %v40_v2  ;;  %v77_v15 = vld [vmem:[%s357_s3 + $0x48] sm:$0xff]  ;;  %v33_v16 = vld [vmem:[%s356_s1 + $0x30] sm:$0xff]  ;;  %v76_v17 = vld [vmem:[%s357_s3 + $0x40] sm:$0xff] }
   0x7   :  { %90 = vmatpush.msra.mxu1 %v81_v7  ;;  %v32_v18 = vld [vmem:[%s356_s1 + $0x28] sm:$0xff]  ;;  %v75_v19 = vld [vmem:[%s357_s3 + $0x38] sm:$0xff]  ;;  %v31_v20 = vld [vmem:[%s356_s1 + $0x20] sm:$0xff] }
   0x8   :  { %50 = vmatpush.msra.mxu0 %v39_v3  ;;  %v74_v21 = vld [vmem:[%s357_s3 + $0x30] sm:$0xff]  ;;  %v30_v22 = vld [vmem:[%s356_s1 + $0x18] sm:$0xff]  ;;  %v73_v23 = vld [vmem:[%s357_s3 + $0x28] sm:$0xff] }
   0x9   :  { %91 = vmatpush.msra.mxu1 %v80_v9  ;;  %v29_v24 = vld [vmem:[%s356_s1 + $0x10] sm:$0xff]  ;;  %v72_v25 = vld [vmem:[%s357_s3 + $0x20] sm:$0xff]  ;;  %v28_v26 = vld [vmem:[%s356_s1 + $0x8] sm:$0xff] }
   0xa   :  { %51 = vmatpush.msra.mxu0 %v38_v5  ;;  %v71_v27 = vld [vmem:[%s357_s3 + $0x18] sm:$0xff]  ;;  %v27_v28 = vld [vmem:[%s356_s1] sm:$0xff]  ;;  %v70_v30 = vld [vmem:[%s357_s3 + $0x10] sm:$0xff] }
   0xb   :  { %92 = vmatpush.msra.mxu1 %v79_v11  ;;  %v26_v29 = vld [vmem:[%s359_s0] sm:$0xff]  ;;  %v69_v31 = vld [vmem:[%s357_s3 + $0x8] sm:$0xff]  ;;  %v124_v33 = vld [vmem:[%s361_s5 + $0x78] sm:$0xff] }
   0xc   :  { %52 = vmatpush.msra.mxu0 %v37_v8  ;;  %v68_v32 = vld [vmem:[%s357_s3] sm:$0xff]  ;;  %v123_v34 = vld [vmem:[%s361_s5 + $0x70] sm:$0xff]  ;;  %129 = vmatpush.msra.mxu2 %v124_v33  ;;  %v122_v35 = vld [vmem:[%s361_s5 + $0x68] sm:$0xff] }
   0xd   :  { %93 = vmatpush.msra.mxu1 %v78_v13  ;;  %v121_v36 = vld [vmem:[%s361_s5 + $0x60] sm:$0xff]  ;;  %v120_v37 = vld [vmem:[%s361_s5 + $0x58] sm:$0xff]  ;;  %v119_v38 = vld [vmem:[%s361_s5 + $0x50] sm:$0xff] }
   0xe   :  { %53 = vmatpush.msra.mxu0 %v36_v10  ;;  %130 = vmatpush.msra.mxu2 %v123_v34  ;;  %v118_v39 = vld [vmem:[%s361_s5 + $0x48] sm:$0xff]  ;;  %v117_v40 = vld [vmem:[%s361_s5 + $0x40] sm:$0xff]  ;;  %v116_v41 = vld [vmem:[%s361_s5 + $0x38] sm:$0xff] }
   0xf   :  { %94 = vmatpush.msra.mxu1 %v77_v15  ;;  %v115_v42 = vld [vmem:[%s361_s5 + $0x30] sm:$0xff]  ;;  %v114_v43 = vld [vmem:[%s361_s5 + $0x28] sm:$0xff]  ;;  %v113_v44 = vld [vmem:[%s361_s5 + $0x20] sm:$0xff] }
  0x10   :  { %54 = vmatpush.msra.mxu0 %v35_v12  ;;  %131 = vmatpush.msra.mxu2 %v122_v35  ;;  %v112_v45 = vld [vmem:[%s361_s5 + $0x18] sm:$0xff]  ;;  %v154_v46 = vld [vmem:[%s358_s2] ss:$0 sm:$0xff]  ;;  %v111_v50 = vld [vmem:[%s361_s5 + $0x10] sm:$0xff] }
  0x11   :  { %95 = vmatpush.msra.mxu1 %v76_v17  ;;  %v110_v51 = vld [vmem:[%s361_s5 + $0x8] sm:$0xff]  ;;  %v109_v52 = vld [vmem:[%s361_s5] sm:$0xff] }
  0x12   :  { %55 = vmatpush.msra.mxu0 %v34_v14  ;;  %132 = vmatpush.msra.mxu2 %v121_v36  ;;  %v155_v53 = vld [vmem:[%s360_s4] ss:$0 sm:$0xff] }
  0x13   :  { %96 = vmatpush.msra.mxu1 %v75_v19  ;;  %v156_v57 = vld [vmem:[%s362_s6] ss:$0 sm:$0xff] }
  0x14   :  { %56 = vmatpush.msra.mxu0 %v33_v16  ;;  %133 = vmatpush.msra.mxu2 %v120_v37 }
  0x15   :  { %97 = vmatpush.msra.mxu1 %v74_v21 }
  0x16   :  { %57 = vmatpush.msra.mxu0 %v32_v18  ;;  %134 = vmatpush.msra.mxu2 %v119_v38 }
  0x17   :  { %98 = vmatpush.msra.mxu1 %v73_v23 }
  0x18   :  { %58 = vmatpush.msra.mxu0 %v31_v20  ;;  %135 = vmatpush.msra.mxu2 %v118_v39 }
  0x19   :  { %99 = vmatpush.msra.mxu1 %v72_v25 }
  0x1a   :  { %59 = vmatpush.msra.mxu0 %v30_v22  ;;  %136 = vmatpush.msra.mxu2 %v117_v40 }
  0x1b   :  { %100 = vmatpush.msra.mxu1 %v71_v27 }
  0x1c   :  { %60 = vmatpush.msra.mxu0 %v29_v24  ;;  %137 = vmatpush.msra.mxu2 %v116_v41 }
  0x1d   :  { %101 = vmatpush.msra.mxu1 %v70_v30 }
  0x1e   :  { %61 = vmatpush.msra.mxu0 %v28_v26  ;;  %138 = vmatpush.msra.mxu2 %v115_v42 }
  0x1f   :  { %102 = vmatpush.msra.mxu1 %v69_v31 }
  0x20   :  { %62 = vmatpush.msra.mxu0 %v27_v28  ;;  %139 = vmatpush.msra.mxu2 %v114_v43 }
  0x21   :  { %63 = vmatmul.f32.vlgmr.msra.gmra.mxu0 %v26_v29  ;;  %103 = vmatpush.msra.mxu1 %v68_v32 }
  0x22   :  { %140 = vmatpush.msra.mxu2 %v113_v44 }
  0x24   :  { %141 = vmatpush.msra.mxu2 %v112_v45 }
  0x26   :  { %142 = vmatpush.msra.mxu2 %v111_v50 }
  0x28   :  { %143 = vmatpush.msra.mxu2 %v110_v51 }
  0x2a   :  { %144 = vmatpush.msra.mxu2 %v109_v52 }
  0x9e   :  { %v64_v47 = vpop.f32.mrf.mxu0 }
  0x9f   :  { %v65_v48 = vadd.f32 %v154_v46, %v64_v47 }
  0xa1   :  { %v67_v49 = vmax.f32 %v65_v48, 0.0 }
  0xa3   :  { %104 = vmatmul.f32.vlgmr.msra.gmra.mxu1 %v67_v49 }
 0x120   :  { %v105_v54 = vpop.f32.mrf.mxu1 }
 0x121   :  { %v106_v55 = vadd.f32 %v155_v53, %v105_v54 }
 0x123   :  { %v108_v56 = vmax.f32 %v106_v55, 0.0 }
 0x125   :  { %145 = vmatmul.f32.vlgmr.msra.gmra.mxu2 %v108_v56 }
 0x1a8   :  { %v146_v58 = vpop.f32.mrf.mxu2 }
 0x1a9   :  { %v147_v59 = vadd.f32 %v156_v57, %v146_v58 }
 0x1ab   :  { %149 = vst [vmem:[%s363_s7] sm:$0xff] %v147_v59 }

</bundles_post_ra>
